<compile_context>
chip_gen: v7x
topology: tpu7x:2x2x1
jax: 0.10.0
libtpu: 0.0.40
codegen_flags: <defaults>
</compile_context>

<pallas_src>
import jax
import jax.numpy as jnp
from jax.experimental import pallas as pl
from jax.experimental.pallas import tpu as pltpu

_MAX_TILE_ROWS = 2048  # (2048, 128) f32 tile = 1 MiB; 4 streams x 2 buffers = 8 MiB VMEM


def _make_kernel(has_fine, has_weights):
    """Kernel over one (TILE_R, 128) row tile of every streamed tensor.

    Ref order: pred_coarse[, pred_fine], target[, weights], out
    Output: (1, K) SMEM block of per-tile weighted squared-error partial sums.
    """

    def kernel(*refs):
        i = 0
        pc_ref = refs[i]; i += 1
        pf_ref = None
        if has_fine:
            pf_ref = refs[i]; i += 1
        tgt_ref = refs[i]; i += 1
        w_ref = None
        if has_weights:
            w_ref = refs[i]; i += 1
        out_ref = refs[i]

        tgt = tgt_ref[...].astype(jnp.float32)
        w = w_ref[...].astype(jnp.float32) if has_weights else None

        dc = pc_ref[...].astype(jnp.float32) - tgt
        sq_c = dc * dc
        if has_weights:
            sq_c = sq_c * w
        out_ref[0, 0] = jnp.sum(sq_c)

        if has_fine:
            df = pf_ref[...].astype(jnp.float32) - tgt
            sq_f = df * df
            if has_weights:
                sq_f = sq_f * w
            out_ref[0, 1] = jnp.sum(sq_f)

    return kernel


def _tile_rows(n_elem):
    rows = pl.cdiv(n_elem, 128)
    rows = pl.cdiv(rows, 8) * 8  # multiple of 8 sublanes for (8,128) tiling
    return int(min(_MAX_TILE_ROWS, rows))


def _pad_flatten(x, padded_rows):
    """Flatten to (padded_rows, 128), zero-padding the tail. Keeps native dtype."""
    flat = x.reshape(-1)
    n_pad = padded_rows * 128
    if n_pad != flat.shape[0]:
        flat = jnp.pad(flat, (0, n_pad - flat.shape[0]))
    return flat.reshape(padded_rows, 128)


def _row_spec(tile_r):
    return pl.BlockSpec((tile_r, 128), lambda r: (r, 0))


def depth_loss(inputs, targets, weights=1.0, lambda_ds=1.0):
    """inputs: dict with 'depth_coarse' and optionally 'depth_fine' (same shape as targets)."""
    lam = lambda_ds / 3.0
    n_elem = int(targets.size)

    tile_r = _tile_rows(n_elem)
    num_tiles = int(pl.cdiv(pl.cdiv(n_elem, 128), tile_r))
    padded_rows = num_tiles * tile_r

    has_fine = 'depth_fine' in inputs
    keys = ['coarse'] + (['fine'] if has_fine else [])
    K = len(keys)

    w_arr = jnp.asarray(weights)
    has_weights = int(w_arr.size) != 1  # only stream per-element weights when non-scalar

    args = [_pad_flatten(inputs['depth_coarse'], padded_rows)]
    in_specs = [_row_spec(tile_r)]
    if has_fine:
        args.append(_pad_flatten(inputs['depth_fine'], padded_rows))
        in_specs.append(_row_spec(tile_r))
    args.append(_pad_flatten(targets, padded_rows))
    in_specs.append(_row_spec(tile_r))
    if has_weights:
        w_full = jnp.broadcast_to(w_arr, targets.shape)
        args.append(_pad_flatten(w_full, padded_rows))  # zero-padded -> no contribution
        in_specs.append(_row_spec(tile_r))

    partials = pl.pallas_call(
        _make_kernel(has_fine, has_weights),
        out_shape=jax.ShapeDtypeStruct((num_tiles, K), jnp.float32),
        grid_spec=pltpu.PrefetchScalarGridSpec(
            num_scalar_prefetch=0,
            grid=(num_tiles,),
            in_specs=in_specs,
            out_specs=pl.BlockSpec((1, K), lambda r: (r, 0),
                                   memory_space=pltpu.MemorySpace.SMEM),
        ),
        compiler_params=pltpu.CompilerParams(
            dimension_semantics=("parallel",)),
    )(*args)

    sums = jnp.sum(partials, axis=0)  # (K,) f32

    scale = jnp.float32(lam / n_elem)
    if not has_weights:
        scale = scale * w_arr.reshape(()).astype(jnp.float32)

    loss_dict = {}
    total = jnp.float32(0.0)
    for i, k in enumerate(keys):
        val = sums[i] * scale
        loss_dict[f'{k}_ds'] = val
        total = total + val
    return total, loss_dict


if __name__ == "__main__":
    key = jax.random.PRNGKey(0)
    k1, k2, k3, k4 = jax.random.split(key, 4)

    B, H, W = 2, 16, 16
    depth_coarse = jax.random.normal(k1, (B, H, W), jnp.float32)
    depth_fine = jax.random.normal(k2, (B, H, W), jnp.float32)
    targets = jax.random.normal(k3, (B, H, W), jnp.float32)
    weights = jax.random.uniform(k4, (B, H, W), jnp.float32)

    inputs = {'depth_coarse': depth_coarse, 'depth_fine': depth_fine}

    # Array-weights path (per-pixel weights streamed through the kernel).
    loss, loss_dict = depth_loss(inputs, targets, weights, lambda_ds=1.0)
    jax.block_until_ready(loss)

    lam = 1.0 / 3.0
    ref_c = lam * jnp.mean(weights * (depth_coarse - targets) ** 2)
    ref_f = lam * jnp.mean(weights * (depth_fine - targets) ** 2)
    ref = ref_c + ref_f
    assert jnp.allclose(loss, ref, rtol=1e-5, atol=1e-6), (loss, ref)
    assert jnp.allclose(loss_dict['coarse_ds'], ref_c, rtol=1e-5, atol=1e-6)
    assert jnp.allclose(loss_dict['fine_ds'], ref_f, rtol=1e-5, atol=1e-6)

    # Scalar-weights path (default-style): no per-element weight stream, coarse only.
    loss_s, loss_dict_s = depth_loss({'depth_coarse': depth_coarse}, targets,
                                     weights=2.0, lambda_ds=1.0)
    jax.block_until_ready(loss_s)
    ref_s = lam * jnp.mean(2.0 * (depth_coarse - targets) ** 2)
    assert jnp.allclose(loss_s, ref_s, rtol=1e-5, atol=1e-6), (loss_s, ref_s)
    assert jnp.allclose(loss_dict_s['coarse_ds'], ref_s, rtol=1e-5, atol=1e-6)

    print("KERNEL_OK")
</pallas_src>

<mosaic_0001>
module attributes {stable_mosaic.version = 11 : i64} {
  func.func @kernel(%arg0: i32, %arg1: memref<8x128xf32, #tpu.memory_space<vmem>>, %arg2: memref<8x128xf32, #tpu.memory_space<vmem>>, %arg3: memref<8x128xf32, #tpu.memory_space<vmem>>, %arg4: memref<8x128xf32, #tpu.memory_space<vmem>>, %arg5: memref<1x2xf32, #tpu.memory_space<smem>>) attributes {dimension_semantics = [#tpu.dimension_semantics<parallel>], iteration_bounds = array<i64: 1>, scalar_prefetch = 0 : i64, scratch_operands = 0 : i64, tpu.core_type = #tpu.core_type<tc>, window_params = [{transform_indices = @transform_0, window_bounds = array<i64: 8, 128>}, {transform_indices = @transform_1, window_bounds = array<i64: 8, 128>}, {transform_indices = @transform_2, window_bounds = array<i64: 8, 128>}, {transform_indices = @transform_3, window_bounds = array<i64: 8, 128>}, {transform_indices = @transform_4, window_bounds = array<i64: 1, 2>}]} {
    %c0 = arith.constant 0 : index
    %c0_0 = arith.constant 0 : index
    %0 = vector.load %arg3[%c0, %c0_0] : memref<8x128xf32, #tpu.memory_space<vmem>>, vector<8x128xf32>
    %c0_1 = arith.constant 0 : index
    %c0_2 = arith.constant 0 : index
    %1 = vector.load %arg4[%c0_1, %c0_2] : memref<8x128xf32, #tpu.memory_space<vmem>>, vector<8x128xf32>
    %c0_3 = arith.constant 0 : index
    %c0_4 = arith.constant 0 : index
    %2 = vector.load %arg1[%c0_3, %c0_4] : memref<8x128xf32, #tpu.memory_space<vmem>>, vector<8x128xf32>
    %3 = arith.subf %2, %0 : vector<8x128xf32>
    %4 = arith.mulf %3, %3 : vector<8x128xf32>
    %5 = arith.mulf %4, %1 : vector<8x128xf32>
    %6 = vector.shape_cast %5 : vector<8x128xf32> to vector<1x8x128xf32>
    %cst = arith.constant dense<0.000000e+00> : vector<1xf32>
    %7 = vector.multi_reduction <add>, %6, %cst [1, 2] : vector<1x8x128xf32> to vector<1xf32>
    %8 = vector.shape_cast %7 : vector<1xf32> to vector<1x1x1xf32>
    %9 = vector.extract %8[0, 0, 0] : f32 from vector<1x1x1xf32>
    %c0_5 = arith.constant 0 : index
    %c0_6 = arith.constant 0 : index
    %10 = memref.load %arg5[%c0_5, %c0_6] : memref<1x2xf32, #tpu.memory_space<smem>>
    memref.store %9, %arg5[%c0_5, %c0_6] : memref<1x2xf32, #tpu.memory_space<smem>>
    %c0_7 = arith.constant 0 : index
    %c0_8 = arith.constant 0 : index
    %11 = vector.load %arg2[%c0_7, %c0_8] : memref<8x128xf32, #tpu.memory_space<vmem>>, vector<8x128xf32>
    %12 = arith.subf %11, %0 : vector<8x128xf32>
    %13 = arith.mulf %12, %12 : vector<8x128xf32>
    %14 = arith.mulf %13, %1 : vector<8x128xf32>
    %15 = vector.shape_cast %14 : vector<8x128xf32> to vector<1x8x128xf32>
    %cst_9 = arith.constant dense<0.000000e+00> : vector<1xf32>
    %16 = vector.multi_reduction <add>, %15, %cst_9 [1, 2] : vector<1x8x128xf32> to vector<1xf32>
    %17 = vector.shape_cast %16 : vector<1xf32> to vector<1x1x1xf32>
    %18 = vector.extract %17[0, 0, 0] : f32 from vector<1x1x1xf32>
    %c0_10 = arith.constant 0 : index
    %c1 = arith.constant 1 : index
    %19 = memref.load %arg5[%c0_10, %c1] : memref<1x2xf32, #tpu.memory_space<smem>>
    memref.store %18, %arg5[%c0_10, %c1] : memref<1x2xf32, #tpu.memory_space<smem>>
    return
  }
  func.func @transform_0(%arg0: i32) -> (i32, i32) {
    %c0_i32 = arith.constant 0 : i32
    %c0_i32_0 = arith.constant 0 : i32
    return %arg0, %c0_i32 : i32, i32
  }
  func.func @transform_1(%arg0: i32) -> (i32, i32) {
    %c0_i32 = arith.constant 0 : i32
    %c0_i32_0 = arith.constant 0 : i32
    return %arg0, %c0_i32 : i32, i32
  }
  func.func @transform_2(%arg0: i32) -> (i32, i32) {
    %c0_i32 = arith.constant 0 : i32
    %c0_i32_0 = arith.constant 0 : i32
    return %arg0, %c0_i32 : i32, i32
  }
  func.func @transform_3(%arg0: i32) -> (i32, i32) {
    %c0_i32 = arith.constant 0 : i32
    %c0_i32_0 = arith.constant 0 : i32
    return %arg0, %c0_i32 : i32, i32
  }
  func.func @transform_4(%arg0: i32) -> (i32, i32) {
    %c0_i32 = arith.constant 0 : i32
    %c0_i32_0 = arith.constant 0 : i32
    return %arg0, %c0_i32 : i32, i32
  }
}

</mosaic_0001>

<bundles_post_ra>
// kernel: tpu_custom_call.1
= control target key start
LH: loop header
LB: loop body
LE: loop exit
PB: predicated region body
PF: predicated region fallthrough
CT: control target
= control target key end

     0   :  { %9 = vsyncpa [#allocation3], 0  ;;  %s270_s0 = inlined_call_operand.hbm [shape: f32[8,128], index: 0, kind: input, shape index: {}]   ;;  %s271_s1 = inlined_call_operand.hbm [shape: f32[8,128], index: 1, kind: input, shape index: {}]   ;;  %s272_s2 = inlined_call_operand.hbm [shape: f32[8,128], index: 2, kind: input, shape index: {}]   ;;  %s273_s3 = inlined_call_operand.vmem [shape: f32[8,128], index: 3, kind: input, shape index: {}]   ;;  %s274_s4 = inlined_call_operand.hbm [shape: f32[1,2], index: 4, kind: output, shape index: {}]  }
   0x1   :  { %10 = vsyncpa [#allocation6], 0 }
   0x2   :  { %11 = vsyncpa [#allocation4], 0  ;;  %s190_s15 = smov [#allocation5]   ;;  %s191_s17 = smov [#allocation2]  }
   0x3   :  { %s28_s16 = sshll.u32 %s190_s15, 4  ;;  %s18_s18 = sshll.u32 %s191_s17, 4  ;;  %s29_s16 = int_to_ptr.vmem [resolvable:$true] %s28_s16  ;;  %s19_s18 = int_to_ptr.vmem [resolvable:$true] %s18_s18 }
   0x4   :  { %s108_s21 = scalar_lea.hbm %s271_s1, 128 }
   0x5   :  { %p109_p0 = scmp.ne.s32.totalorder %s271_s1, %s108_s21  ;;  %p112_p1 = scmp.lt.u32.totalorder %s108_s21, %s271_s1 }
   0x7   :  { %p114_p2 = pnand %p112_p1, %p109_p0 }
   0x9   :  { %117 = shalt.err (!%p114_p2)
}
   0xa   :  { %s118_s26 = scalar_lea.vmem %s29_s16, 128  ;;  %p123_p4 = scmp.lt.s32.totalorder %s29_s16, %s29_s16 }
   0xb   :  { %p119_p3 = scmp.ne.s32.totalorder %s29_s16, %s118_s26  ;;  %p124_p5 = scmp.lt.s32.totalorder %s118_s26, %s118_s26 }
   0xd   :  { %p125_p6 = por %p124_p5, %p123_p4 }
   0xf   :  { %p126_p7 = pnand %p125_p6, %p119_p3 }
  0x11   :  { %129 = shalt.err (!%p126_p7)
}
  0x12   :  { %31 = dma.hbm_to_vmem [thread:$0]  %s271_s1, 128, %s29_s16, [#allocation6]  }
  0x13   :  { %s130_s5 = scalar_lea.hbm %s270_s0, 128 }
  0x14   :  { %p131_p8 = scmp.ne.s32.totalorder %s270_s0, %s130_s5  ;;  %p134_p9 = scmp.lt.u32.totalorder %s130_s5, %s270_s0 }
  0x16   :  { %p136_p10 = pnand %p134_p9, %p131_p8 }
  0x18   :  { %139 = shalt.err (!%p136_p10)
}
  0x19   :  { %s140_s10 = scalar_lea.vmem %s19_s18, 128  ;;  %p145_p12 = scmp.lt.s32.totalorder %s19_s18, %s19_s18 }
  0x1a   :  { %p141_p11 = scmp.ne.s32.totalorder %s19_s18, %s140_s10  ;;  %p146_p13 = scmp.lt.s32.totalorder %s140_s10, %s140_s10 }
  0x1c   :  { %p147_p0 = por %p146_p13, %p145_p12 }
  0x1e   :  { %p148_p1 = pnand %p147_p0, %p141_p11 }
  0x20   :  { %151 = shalt.err (!%p148_p1)
}
  0x21   :  { %21 = dma.hbm_to_vmem [thread:$0]  %s270_s0, 128, %s19_s18, [#allocation3]  }
  0x22   :  { %s192_s12 = smov [#allocation7]   ;;  %s152_s16 = scalar_lea.hbm %s272_s2, 128 }
  0x23   :  { %s38_s13 = sshll.u32 %s192_s12, 4  ;;  %p153_p2 = scmp.ne.s32.totalorder %s272_s2, %s152_s16  ;;  %s39_s13 = int_to_ptr.vmem [resolvable:$true] %s38_s13 }
  0x24   :  { %p156_p3 = scmp.lt.u32.totalorder %s152_s16, %s272_s2 }
  0x26   :  { %p158_p4 = pnand %p156_p3, %p153_p2 }
  0x28   :  { %161 = shalt.err (!%p158_p4)
}
  0x29   :  { %s162_s22 = scalar_lea.vmem %s39_s13, 128  ;;  %p167_p6 = scmp.lt.s32.totalorder %s39_s13, %s39_s13 }
  0x2a   :  { %p163_p5 = scmp.ne.s32.totalorder %s39_s13, %s162_s22  ;;  %p168_p7 = scmp.lt.s32.totalorder %s162_s22, %s162_s22 }
  0x2c   :  { %p169_p8 = por %p168_p7, %p167_p6 }
  0x2e   :  { %p170_p9 = pnand %p169_p8, %p163_p5 }
  0x30   :  { %173 = shalt.err (!%p170_p9)
}
  0x31   :  { %41 = dma.hbm_to_vmem [thread:$0]  %s272_s2, 128, %s39_s13, [#allocation6]  }
  0x32   :  { %184 = dma.done.wait [#allocation3], 128  }
  0x33   :  { %185 = vsyncadd [#allocation3], 4294967168 }
  0x34   :  { %186 = dma.done.wait [#allocation6], 256  }
  0x35   :  { %187 = vsyncadd [#allocation6], 4294967040  ;;  %v53_v0 = vld [vmem:[#allocation7] sm:$0xff]  ;;  %v55_v1 = vld [vmem:[#allocation2] sm:$0xff]  ;;  %s174_s27 = scalar_lea.hbm %s274_s4, 16 }
  0x36   :  { %v56_v2 = vsub.f32 %v55_v1, %v53_v0  ;;  %v70_v3 = vld [vmem:[#allocation5] sm:$0xff]  ;;  %v54_v4 = vld [vmem:[%s273_s3] sm:$0xff]  ;;  %p175_p10 = scmp.ne.s32.totalorder %s274_s4, %s174_s27  ;;  %p178_p11 = scmp.lt.u32.totalorder %s174_s27, %s274_s4 }
  0x37   :  { %v71_v5 = vsub.f32 %v70_v3, %v53_v0 }
  0x38   :  { %v57_v6 = vmul.f32 %v56_v2, %v56_v2  ;;  %p180_p12 = pnand %p178_p11, %p175_p10 }
  0x39   :  { %v72_v7 = vmul.f32 %v71_v5, %v71_v5 }
  0x3a   :  { %v58_v8 = vmul.f32 %v57_v6, %v54_v4 }
  0x3b   :  { %v73_v9 = vmul.f32 %v72_v7, %v54_v4 }
  0x3c   :  { %59 = vadd.xlane.f32.xlu0 %v58_v8 }
  0x40   :  { %74 = vadd.xlane.f32.xlu0 %v73_v9 }
  0xc9   :  { %v60_v10 = vpop.xlane.xlu0 %59 }
  0xca   :  { %v61_v11 = vrot.slane %v60_v10, 4 }
  0xcc   :  { %v62_v12 = vadd.f32 %v61_v11, %v60_v10 }
  0xcd   :  { %v75_v13 = vpop.xlane.xlu0 %74 }
  0xce   :  { %v63_v14 = vrot.slane %v62_v12, 2  ;;  %v76_v15 = vrot.slane %v75_v13, 4 }
  0xd0   :  { %v77_v16 = vadd.f32 %v76_v15, %v75_v13  ;;  %v64_v17 = vadd.f32 %v63_v14, %v62_v12 }
  0xd2   :  { %v78_v18 = vrot.slane %v77_v16, 2  ;;  %v65_v19 = vrot.slane %v64_v17, 1 }
  0xd4   :  { %v79_v20 = vadd.f32 %v78_v18, %v77_v16  ;;  %v66_v21 = vadd.f32 %v65_v19, %v64_v17 }
  0xd6   :  { %100 = vpush %v66_v21  ;;  %v80_v22 = vrot.slane %v79_v20, 1 }
  0xd8   :  { %v81_v23 = vadd.f32 %v80_v22, %v79_v20 }
  0xda   :  { %102 = vpush %v81_v23 }
 0x107   :  { %s101_s2 = spop %100 }
 0x108   :  { %69 = sst [smem:[#allocation8]] %s101_s2 }
 0x10b   :  { %s103_s3 = spop %102 }
 0x10c   :  { %84 = sst [smem:[#allocation8 + $0x1]] %s103_s3 }
 0x10d   :  { %183 = shalt.err (!%p180_p12)
}
 0x10e   :  { %s193_s6 = smov [#allocation8]  }
 0x10f   :  { %92 = dma.smem_to_hbm %s193_s6, 16, %s274_s4, [#allocation4]  }
 0x110   :  { %188 = dma.done.wait [#allocation4], 16  }
 0x111   :  { %189 = vsyncadd [#allocation4], 4294967280 }
 0x112   :  { %96 = sfence }
 0x113   :  { %97 = vsyncpa [#allocation3], 1 }
 0x114   :  { %98 = vsyncpa [#allocation6], 1 }
 0x115   :  { %99 = vsyncpa [#allocation4], 1 }

</bundles_post_ra>
